<compile_context>
chip_gen: v7x
topology: tpu7x:2x2x1
jax: 0.10.0
libtpu: 0.0.40
codegen_flags: <defaults>
</compile_context>

<pallas_src>
import math

import jax
import jax.numpy as jnp
from jax import lax
from jax.experimental import pallas as pl
from jax.experimental.pallas import tpu as pltpu

LN_EPS = 1e-5  # nn.LayerNorm default


def _vmem_limit_bytes():
    """Per-generation VMEM budget with headroom (never all of v7x's 64 MiB)."""
    cap = 128 * 1024 * 1024
    try:
        cap = int(pltpu.get_tpu_info().vmem_capacity_bytes)
    except Exception:
        pass
    # Leave >= 16 MiB headroom for compiler-internal scratch / pipeline buffers.
    return int(min(max(cap - 16 * 1024 * 1024, 16 * 1024 * 1024),
                   64 * 1024 * 1024))


def _layer_norm(x, gamma, beta):
    # Two-pass variance (biased, like torch LayerNorm) for numerical safety.
    mean = jnp.mean(x, axis=-1, keepdims=True)
    xc = x - mean
    var = jnp.mean(xc * xc, axis=-1, keepdims=True)
    return xc * lax.rsqrt(var + LN_EPS) * gamma + beta


def _gelu_exact(x):
    # nn.GELU() default = exact erf formulation (kept for PyTorch parity).
    return 0.5 * x * (1.0 + lax.erf(x * (1.0 / math.sqrt(2.0))))


def attention_kernel(x_ref, wqkv_ref, bqkv_ref, wo_ref, acc_ref, attn_ref):
    h = pl.program_id(1)
    hd = wo_ref.shape[1]

    x_bf = x_ref[0]                                   # (S, E), bf16 (wrapper cast)

    # Fused per-head QKV projection: one (S,E)@(E,3*hd) bf16 MXU matmul with
    # f32 accumulation.  The 1/sqrt(hd) scale is already folded into the Q
    # columns of wqkv/bqkv in the wrapper.
    qkv = (jnp.dot(x_bf, wqkv_ref[0], preferred_element_type=jnp.float32)
           + bqkv_ref[0])                             # (S, 3*hd) f32

    q = qkv[:, 0:hd]
    k = qkv[:, hd:2 * hd]
    v = qkv[:, 2 * hd:3 * hd]

    # energy[i, j] = sum_d q[i, d] * k[j, d]   (q @ k^T without a transpose op)
    energy = lax.dot_general(q.astype(jnp.bfloat16), k.astype(jnp.bfloat16),
                             (((1,), (1,)), ((), ())),
                             preferred_element_type=jnp.float32)   # (S, S)

    # Numerically-stable softmax with an exact divide (the attention weights
    # are a user-visible output, so no approx reciprocal here).
    energy = energy - jnp.max(energy, axis=-1, keepdims=True)
    p = jnp.exp(energy)
    attn = p / jnp.sum(p, axis=-1, keepdims=True)
    attn_ref[0, 0] = attn.astype(attn_ref.dtype)      # dense (S, S) store

    # Head contribution to the output projection, accumulated across heads:
    #   sum_h ctx_h @ Wo[h] == concat_h(ctx_h) @ Wo
    ctx = jnp.dot(attn.astype(jnp.bfloat16), v.astype(jnp.bfloat16),
                  preferred_element_type=jnp.float32)              # (S, hd)
    contrib = jnp.dot(ctx.astype(jnp.bfloat16), wo_ref[0],
                      preferred_element_type=jnp.float32)          # (S, E)

    # Output block is resident across the head axis -> accumulate in place.
    @pl.when(h == 0)
    def _():
        acc_ref[0] = contrib

    @pl.when(h > 0)
    def _():
        acc_ref[0] += contrib


def epilogue_kernel(x_ref, acc_ref, bo_ref, w1_ref, b1_ref, w2_ref, b2_ref,
                    g_ref, bt_ref, out_ref):
    x = x_ref[0]                                      # (TS, E) f32
    attn_out = acc_ref[0] + bo_ref[...]               # output-projection bias

    gamma = g_ref[...]
    beta = bt_ref[...]

    # Post-norm residual 1.  The PyTorch module reuses ONE nn.LayerNorm for
    # both norms, so the same gamma/beta are used twice on purpose.
    h1 = _layer_norm(x + attn_out, gamma, beta)       # (TS, E)

    # MLP head: Linear -> GELU(exact erf) -> Linear.  Dropouts are identity.
    hidden = jnp.dot(h1.astype(jnp.bfloat16), w1_ref[...],
                     preferred_element_type=jnp.float32) + b1_ref[...]
    hidden = _gelu_exact(hidden)
    mlp = jnp.dot(hidden.astype(jnp.bfloat16), w2_ref[...],
                  preferred_element_type=jnp.float32) + b2_ref[...]

    # Post-norm residual 2.
    out_ref[0] = _layer_norm(mlp + h1, gamma, beta)


def transformer_block(x, params, num_heads, *, attn_weights_dtype=jnp.float32):
    B, S, E = x.shape
    H = num_heads
    assert E % H == 0, "embed_dim must be divisible by num_heads"
    hd = E // H

    f32, bf16 = jnp.float32, jnp.bfloat16
    scale = 1.0 / math.sqrt(hd)
    vmem_limit = _vmem_limit_bytes()

    # --- wrapper-side weight re-layout: head-major, fused QKV, bf16 ---------
    def per_head_w(w):                     # (E, E) -> (H, E, hd)
        return w.reshape(E, H, hd).transpose(1, 0, 2)

    def per_head_b(b):                     # (1, E) -> (H, 1, hd)
        return b.reshape(H, hd)[:, None, :]

    wqkv_h = jnp.concatenate(
        [per_head_w(params["wq"] * scale),            # scale folded into Q
         per_head_w(params["wk"]),
         per_head_w(params["wv"])], axis=2).astype(bf16)        # (H, E, 3*hd)
    bqkv_h = jnp.concatenate(
        [per_head_b(params["bq"] * scale),
         per_head_b(params["bk"]),
         per_head_b(params["bv"])], axis=2).astype(f32)          # (H, 1, 3*hd)
    wo_h = params["wo"].reshape(H, hd, E).astype(bf16)           # (H, hd, E)

    x_bf = x.astype(bf16)

    # ------------------------- kernel 1: attention --------------------------
    acc, attn_w = pl.pallas_call(
        attention_kernel,
        grid=(B, H),
        in_specs=[
            pl.BlockSpec((1, S, E), lambda b, h: (b, 0, 0)),          # x (bf16)
            pl.BlockSpec((1, E, 3 * hd), lambda b, h: (h, 0, 0)),     # Wqkv[h]
            pl.BlockSpec((1, 1, 3 * hd), lambda b, h: (h, 0, 0)),     # bqkv[h]
            pl.BlockSpec((1, hd, E), lambda b, h: (h, 0, 0)),         # Wo[h]
        ],
        out_specs=[
            pl.BlockSpec((1, S, E), lambda b, h: (b, 0, 0)),          # resident over h
            pl.BlockSpec((1, 1, S, S), lambda b, h: (b, h, 0, 0)),    # attn weights
        ],
        out_shape=(
            jax.ShapeDtypeStruct((B, S, E), f32),
            jax.ShapeDtypeStruct((B, H, S, S), attn_weights_dtype),
        ),
        compiler_params=pltpu.CompilerParams(
            dimension_semantics=("parallel", "arbitrary"),
            vmem_limit_bytes=vmem_limit,
        ),
    )(x_bf, wqkv_h, bqkv_h, wo_h)

    # ----------------- kernel 2: residual + LN + MLP epilogue ---------------
    w1 = params["w1"].astype(bf16)
    w2 = params["w2"].astype(bf16)

    # Per-token ops: tile the sequence (only along clean divisors) so both
    # grid axes are parallel and megacore can balance even at small batch.
    TS = S
    for cand in (256, 128, 64):
        if S % cand == 0:
            TS = cand
            break
    n_s = pl.cdiv(S, TS)

    def run_epilogue(single_buffer_weights):
        def const_spec(a):
            # Block index never changes across (b, s) -> single-buffer to save
            # VMEM (critical at ViT-B scale on v7x's 64 MiB VMEM).
            kwargs = {}
            if single_buffer_weights:
                kwargs["pipeline_mode"] = pl.Buffered(1)
            return pl.BlockSpec(a.shape,
                                lambda b, s, _nd=a.ndim: (0,) * _nd,
                                **kwargs)

        return pl.pallas_call(
            epilogue_kernel,
            grid=(B, n_s),
            in_specs=[
                pl.BlockSpec((1, TS, E), lambda b, s: (b, s, 0)),     # x (f32)
                pl.BlockSpec((1, TS, E), lambda b, s: (b, s, 0)),     # attn acc
                const_spec(params["bo"]),
                const_spec(w1), const_spec(params["b1"]),
                const_spec(w2), const_spec(params["b2"]),
                const_spec(params["gamma"]), const_spec(params["beta"]),
            ],
            out_specs=pl.BlockSpec((1, TS, E), lambda b, s: (b, s, 0)),
            out_shape=jax.ShapeDtypeStruct((B, S, E), f32),
            compiler_params=pltpu.CompilerParams(
                dimension_semantics=("parallel", "parallel"),
                vmem_limit_bytes=vmem_limit,
            ),
        )(x, acc, params["bo"], w1, params["b1"], w2, params["b2"],
          params["gamma"], params["beta"])

    try:
        out = run_epilogue(True)       # single-buffer constant-index weights
    except Exception:                  # pragma: no cover - jax w/o Buffered(1)
        out = run_epilogue(False)

    return out, attn_w


def _linear_params(key, fan_in, fan_out):
    # Deterministic, PyTorch-Linear-style uniform init; weight stored as (in, out).
    kw, kb = jax.random.split(key)
    bound = 1.0 / math.sqrt(fan_in)
    w = jax.random.uniform(kw, (fan_in, fan_out), jnp.float32, -bound, bound)
    b = jax.random.uniform(kb, (1, fan_out), jnp.float32, -bound, bound)
    return w, b


if __name__ == "__main__":
    B, S, E, H, HIDDEN = 2, 8, 32, 4, 64

    root = jax.random.PRNGKey(0)
    kx, kq, kk, kv, ko, k1, k2 = jax.random.split(root, 7)

    wq, bq = _linear_params(kq, E, E)
    wk, bk = _linear_params(kk, E, E)
    wv, bv = _linear_params(kv, E, E)
    wo, bo = _linear_params(ko, E, E)
    w1, b1 = _linear_params(k1, E, HIDDEN)
    w2, b2 = _linear_params(k2, HIDDEN, E)

    params = dict(
        wq=wq, bq=bq, wk=wk, bk=bk, wv=wv, bv=bv, wo=wo, bo=bo,
        w1=w1, b1=b1, w2=w2, b2=b2,
        gamma=jnp.ones((1, E), jnp.float32),
        beta=jnp.zeros((1, E), jnp.float32),
    )

    x = jax.random.normal(kx, (B, S, E), jnp.float32)

    out, attn_w = transformer_block(x, params, num_heads=H)
    jax.block_until_ready(out)
    jax.block_until_ready(attn_w)

    assert out.shape == (B, S, E)
    assert attn_w.shape == (B, H, S, S)
    print("KERNEL_OK")
</pallas_src>

<mosaic_0001>
module attributes {stable_mosaic.version = 11 : i64} {
  func.func @attention_kernel(%arg0: i32, %arg1: i32, %arg2: memref<1x8x32xbf16, #tpu.memory_space<vmem>>, %arg3: memref<1x32x24xbf16, #tpu.memory_space<vmem>>, %arg4: memref<1x1x24xf32, #tpu.memory_space<vmem>>, %arg5: memref<1x8x32xbf16, #tpu.memory_space<vmem>>, %arg6: memref<1x8x32xf32, #tpu.memory_space<vmem>>, %arg7: memref<1x1x8x8xf32, #tpu.memory_space<vmem>>) attributes {dimension_semantics = [#tpu.dimension_semantics<parallel>, #tpu.dimension_semantics<arbitrary>], iteration_bounds = array<i64: 2, 4>, scalar_prefetch = 0 : i64, scratch_operands = 0 : i64, tpu.core_type = #tpu.core_type<tc>, window_params = [{transform_indices = @transform_0, window_bounds = array<i64: 1, 8, 32>}, {transform_indices = @transform_1, window_bounds = array<i64: 1, 32, 24>}, {transform_indices = @transform_2, window_bounds = array<i64: 1, 1, 24>}, {transform_indices = @transform_3, window_bounds = array<i64: 1, 8, 32>}, {transform_indices = @transform_4, window_bounds = array<i64: 1, 8, 32>}, {transform_indices = @transform_5, window_bounds = array<i64: 1, 1, 8, 8>}]} {
    %c0 = arith.constant 0 : index
    %c0_0 = arith.constant 0 : index
    %c0_1 = arith.constant 0 : index
    %0 = vector.load %arg2[%c0, %c0_0, %c0_1] : memref<1x8x32xbf16, #tpu.memory_space<vmem>>, vector<1x8x32xbf16>
    %1 = vector.shape_cast %0 : vector<1x8x32xbf16> to vector<8x32xbf16>
    %c0_2 = arith.constant 0 : index
    %c0_3 = arith.constant 0 : index
    %c0_4 = arith.constant 0 : index
    %2 = vector.load %arg3[%c0_2, %c0_3, %c0_4] : memref<1x32x24xbf16, #tpu.memory_space<vmem>>, vector<1x32x24xbf16>
    %3 = vector.shape_cast %2 : vector<1x32x24xbf16> to vector<32x24xbf16>
    %cst = arith.constant dense<0.000000e+00> : vector<8x24xf32>
    %4 = tpu.matmul %1, %3, %cst {dimension_numbers = #tpu.dot_dimension_numbers<[1], [0], [0], [1], [0, 0, 1, 1], [], []>} : vector<8x32xbf16>, vector<32x24xbf16>, vector<8x24xf32> -> vector<8x24xf32>
    %c0_5 = arith.constant 0 : index
    %c0_6 = arith.constant 0 : index
    %c0_7 = arith.constant 0 : index
    %5 = vector.load %arg4[%c0_5, %c0_6, %c0_7] : memref<1x1x24xf32, #tpu.memory_space<vmem>>, vector<1x1x24xf32>
    %6 = vector.shape_cast %5 : vector<1x1x24xf32> to vector<1x24xf32>
    %7 = vector.broadcast %6 : vector<1x24xf32> to vector<8x24xf32>
    %8 = arith.addf %4, %7 : vector<8x24xf32>
    %9 = vector.extract_strided_slice %8 {offsets = [0, 0], sizes = [8, 8], strides = [1, 1]} : vector<8x24xf32> to vector<8x8xf32>
    %10 = vector.extract_strided_slice %8 {offsets = [0, 8], sizes = [8, 8], strides = [1, 1]} : vector<8x24xf32> to vector<8x8xf32>
    %11 = vector.extract_strided_slice %8 {offsets = [0, 16], sizes = [8, 8], strides = [1, 1]} : vector<8x24xf32> to vector<8x8xf32>
    %12 = arith.truncf %9 : vector<8x8xf32> to vector<8x8xbf16>
    %13 = arith.truncf %10 : vector<8x8xf32> to vector<8x8xbf16>
    %cst_8 = arith.constant dense<0.000000e+00> : vector<8x8xf32>
    %14 = tpu.matmul %12, %13, %cst_8 {dimension_numbers = #tpu.dot_dimension_numbers<[1], [1], [0], [0], [0, 0, 1, 0], [], []>} : vector<8x8xbf16>, vector<8x8xbf16>, vector<8x8xf32> -> vector<8x8xf32>
    %cst_9 = arith.constant dense<0xFF800000> : vector<8xf32>
    %15 = vector.multi_reduction <maximumf>, %14, %cst_9 [1] : vector<8x8xf32> to vector<8xf32>
    %16 = vector.shape_cast %15 : vector<8xf32> to vector<8x1xf32>
    %17 = vector.broadcast %16 : vector<8x1xf32> to vector<8x8xf32>
    %18 = arith.subf %14, %17 : vector<8x8xf32>
    %19 = math.exp %18 : vector<8x8xf32>
    %cst_10 = arith.constant dense<0.000000e+00> : vector<8xf32>
    %20 = vector.multi_reduction <add>, %19, %cst_10 [1] : vector<8x8xf32> to vector<8xf32>
    %21 = vector.shape_cast %20 : vector<8xf32> to vector<8x1xf32>
    %22 = vector.broadcast %21 : vector<8x1xf32> to vector<8x8xf32>
    %23 = arith.divf %19, %22 : vector<8x8xf32>
    %c0_11 = arith.constant 0 : index
    %c0_12 = arith.constant 0 : index
    %c0_13 = arith.constant 0 : index
    %c0_14 = arith.constant 0 : index
    %24 = vector.load %arg7[%c0_11, %c0_12, %c0_13, %c0_14] : memref<1x1x8x8xf32, #tpu.memory_space<vmem>>, vector<1x1x8x8xf32>
    %25 = vector.shape_cast %24 : vector<1x1x8x8xf32> to vector<8x8xf32>
    %26 = vector.shape_cast %23 : vector<8x8xf32> to vector<1x1x8x8xf32>
    tpu.vector_store %arg7[%c0_11, %c0_12, %c0_13, %c0_14], %26 {strides = array<i32>} : memref<1x1x8x8xf32, #tpu.memory_space<vmem>>, vector<1x1x8x8xf32>,
    %27 = arith.truncf %23 : vector<8x8xf32> to vector<8x8xbf16>
    %28 = arith.truncf %11 : vector<8x8xf32> to vector<8x8xbf16>
    %cst_15 = arith.constant dense<0.000000e+00> : vector<8x8xf32>
    %29 = tpu.matmul %27, %28, %cst_15 {dimension_numbers = #tpu.dot_dimension_numbers<[1], [0], [0], [1], [0, 0, 1, 1], [], []>} : vector<8x8xbf16>, vector<8x8xbf16>, vector<8x8xf32> -> vector<8x8xf32>
    %30 = arith.truncf %29 : vector<8x8xf32> to vector<8x8xbf16>
    %c0_16 = arith.constant 0 : index
    %c0_17 = arith.constant 0 : index
    %c0_18 = arith.constant 0 : index
    %31 = vector.load %arg5[%c0_16, %c0_17, %c0_18] : memref<1x8x32xbf16, #tpu.memory_space<vmem>>, vector<1x8x32xbf16>
    %32 = vector.shape_cast %31 : vector<1x8x32xbf16> to vector<8x32xbf16>
    %cst_19 = arith.constant dense<0.000000e+00> : vector<8x32xf32>
    %33 = tpu.matmul %30, %32, %cst_19 {dimension_numbers = #tpu.dot_dimension_numbers<[1], [0], [0], [1], [0, 0, 1, 1], [], []>} : vector<8x8xbf16>, vector<8x32xbf16>, vector<8x32xf32> -> vector<8x32xf32>
    %c0_i32 = arith.constant 0 : i32
    %34 = arith.cmpi eq, %arg1, %c0_i32 : i32
    %35 = arith.extui %34 : i1 to i32
    %c0_i32_20 = arith.constant 0 : i32
    %36 = arith.cmpi ne, %35, %c0_i32_20 : i32
    scf.if %36 {
      %c0_23 = arith.constant 0 : index
      %c0_24 = arith.constant 0 : index
      %c0_25 = arith.constant 0 : index
      %40 = vector.load %arg6[%c0_23, %c0_24, %c0_25] : memref<1x8x32xf32, #tpu.memory_space<vmem>>, vector<1x8x32xf32>
      %41 = vector.shape_cast %40 : vector<1x8x32xf32> to vector<8x32xf32>
      %42 = vector.shape_cast %33 : vector<8x32xf32> to vector<1x8x32xf32>
      tpu.vector_store %arg6[%c0_23, %c0_24, %c0_25], %42 {strides = array<i32>} : memref<1x8x32xf32, #tpu.memory_space<vmem>>, vector<1x8x32xf32>,
    } else {
    }
    %c0_i32_21 = arith.constant 0 : i32
    %37 = arith.cmpi sgt, %arg1, %c0_i32_21 : i32
    %38 = arith.extui %37 : i1 to i32
    %c0_i32_22 = arith.constant 0 : i32
    %39 = arith.cmpi ne, %38, %c0_i32_22 : i32
    scf.if %39 {
      %c0_23 = arith.constant 0 : index
      %c0_24 = arith.constant 0 : index
      %c0_25 = arith.constant 0 : index
      %40 = vector.load %arg6[%c0_23, %c0_24, %c0_25] : memref<1x8x32xf32, #tpu.memory_space<vmem>>, vector<1x8x32xf32>
      %41 = vector.shape_cast %40 : vector<1x8x32xf32> to vector<8x32xf32>
      %42 = arith.addf %41, %33 : vector<8x32xf32>
      %c0_26 = arith.constant 0 : index
      %c0_27 = arith.constant 0 : index
      %c0_28 = arith.constant 0 : index
      %43 = vector.load %arg6[%c0_26, %c0_27, %c0_28] : memref<1x8x32xf32, #tpu.memory_space<vmem>>, vector<1x8x32xf32>
      %44 = vector.shape_cast %43 : vector<1x8x32xf32> to vector<8x32xf32>
      %45 = vector.shape_cast %42 : vector<8x32xf32> to vector<1x8x32xf32>
      tpu.vector_store %arg6[%c0_26, %c0_27, %c0_28], %45 {strides = array<i32>} : memref<1x8x32xf32, #tpu.memory_space<vmem>>, vector<1x8x32xf32>,
    } else {
    }
    return
  }
  func.func @transform_0(%arg0: i32, %arg1: i32) -> (i32, i32, i32) {
    %c0_i32 = arith.constant 0 : i32
    %c0_i32_0 = arith.constant 0 : i32
    %c0_i32_1 = arith.constant 0 : i32
    return %arg0, %c0_i32, %c0_i32_0 : i32, i32, i32
  }
  func.func @transform_1(%arg0: i32, %arg1: i32) -> (i32, i32, i32) {
    %c0_i32 = arith.constant 0 : i32
    %c0_i32_0 = arith.constant 0 : i32
    %c0_i32_1 = arith.constant 0 : i32
    return %arg1, %c0_i32, %c0_i32_0 : i32, i32, i32
  }
  func.func @transform_2(%arg0: i32, %arg1: i32) -> (i32, i32, i32) {
    %c0_i32 = arith.constant 0 : i32
    %c0_i32_0 = arith.constant 0 : i32
    %c0_i32_1 = arith.constant 0 : i32
    return %arg1, %c0_i32, %c0_i32_0 : i32, i32, i32
  }
  func.func @transform_3(%arg0: i32, %arg1: i32) -> (i32, i32, i32) {
    %c0_i32 = arith.constant 0 : i32
    %c0_i32_0 = arith.constant 0 : i32
    %c0_i32_1 = arith.constant 0 : i32
    return %arg1, %c0_i32, %c0_i32_0 : i32, i32, i32
  }
  func.func @transform_4(%arg0: i32, %arg1: i32) -> (i32, i32, i32) {
    %c0_i32 = arith.constant 0 : i32
    %c0_i32_0 = arith.constant 0 : i32
    %c0_i32_1 = arith.constant 0 : i32
    return %arg0, %c0_i32, %c0_i32_0 : i32, i32, i32
  }
  func.func @transform_5(%arg0: i32, %arg1: i32) -> (i32, i32, i32, i32) {
    %c0_i32 = arith.constant 0 : i32
    %c0_i32_0 = arith.constant 0 : i32
    %c0_i32_1 = arith.constant 0 : i32
    return %arg0, %arg1, %c0_i32, %c0_i32_0 : i32, i32, i32, i32
  }
}

</mosaic_0001>

<bundles_post_ra>
// kernel: tpu_custom_call.1
= control target key start
LH: loop header
LB: loop body
LE: loop exit
PB: predicated region body
PF: predicated region fallthrough
CT: control target
= control target key end

     0   :  { %s1882_s0 = inlined_call_operand.hbm [shape: bf16[2,8,32], index: 0, kind: input, shape index: {}]   ;;  %s1883_s1 = inlined_call_operand.hbm [shape: bf16[4,32,24], index: 1, kind: input, shape index: {}]   ;;  %s1884_s2 = inlined_call_operand.hbm [shape: f32[4,1,24], index: 2, kind: input, shape index: {}]   ;;  %s1885_s3 = inlined_call_operand.hbm [shape: bf16[4,8,32], index: 3, kind: input, shape index: {}]   ;;  %s1886_s4 = inlined_call_operand.hbm [shape: f32[2,8,32], index: 4, kind: output, shape index: {0}]   ;;  %s1887_s5 = inlined_call_operand.hbm [shape: f32[2,4,8,8], index: 5, kind: output, shape index: {1}]  }
   0x1   :  { %1913 = sst [smem:[#allocation35_spill]] %s1883_s1 }
   0x2   :  { %1914 = sst [smem:[#allocation36_spill]] %s1886_s4 }
   0x3   :  { %1915 = sst [smem:[#allocation37_spill]] %s1887_s5 }
   0x4   :  { %11 = vsyncpa [#allocation3], 0 }
   0x5   :  { %13 = vsyncpa [#allocation3 + $0x1], 0 }
   0x6   :  { %14 = vsyncpa [#allocation6], 0 }
   0x7   :  { %16 = vsyncpa [#allocation6 + $0x1], 0 }
   0x8   :  { %17 = vsyncpa [#allocation9], 0 }
   0x9   :  { %19 = vsyncpa [#allocation9 + $0x1], 0 }
   0xa   :  { %20 = vsyncpa [#allocation4], 0 }
   0xb   :  { %22 = vsyncpa [#allocation4 + $0x1], 0 }
   0xc   :  { %23 = vsyncpa [#allocation12], 0 }
   0xd   :  { %25 = vsyncpa [#allocation12 + $0x1], 0  ;;  %s1405_s18 = smov 0   ;;  %s1407_s19 = smov 0  }
   0xe   :  { %s1409_s20 = smov 0   ;;  %s1411_s21 = smov 0  }
   0xf   :  { %s1413_s22 = smov 0   ;;  %s1415_s23 = smov 0  }
  0x10   :  { %s1417_s24 = smov 0   ;;  %s1419_s25 = smov 0  }
  0x11   :  { %s1421_s26 = smov 0   ;;  %s1423_s27 = smov 0  }
  0x12   :  { %s1425_s28 = smov 0   ;;  %s1427_s29 = smov 0  }
  0x13   :  { %s1429_s30 = smov 0   ;;  %s1431_s6 = smov 0  }
  0x14 LB: > { %1916 = sst [smem:[#allocation18_spill]] %s1309_s18  ;;  %p1891_p0 = scmp.eq.s32.totalorder %s1361_s6, 0  ;;  %s1361_s6 = sphi %s1431_s6, %s31_s6   ;;  %s1357_s30 = sphi %s1429_s30, %s1980_s30   ;;  %s1353_s29 = sphi %s1427_s29, %s1988_s29   ;;  %s1349_s28 = sphi %s1425_s28, %s1978_s28   ;;  %s1345_s27 = sphi %s1423_s27, %s1987_s27   ;;  %s1341_s26 = sphi %s1421_s26, %s1977_s26   ;;  %s1337_s25 = sphi %s1419_s25, %s1986_s25   ;;  %s1333_s24 = sphi %s1417_s24, %s1985_s24   ;;  %s1329_s23 = sphi %s1415_s23, %s1975_s23   ;;  %s1325_s22 = sphi %s1413_s22, %s1984_s22   ;;  %s1321_s21 = sphi %s1411_s21, %s1983_s21   ;;  %s1317_s20 = sphi %s1409_s20, %s1973_s20   ;;  %s1313_s19 = sphi %s1407_s19, %s1982_s19   ;;  %s1309_s18 = sphi %s1405_s18, %s1981_s18  }
  0x15   : > { %1917 = sst [smem:[#allocation19_spill]] %s1317_s20  ;;  %p83_p1 = scmp.ne.s32.totalorder %s1329_s23, %s1325_s22 }
  0x16   : > { %1918 = sst [smem:[#allocation20_spill]] %s1329_s23  ;;  %p1890_p2 = scmp.lt.s32.totalorder %s1361_s6, 8 }
  0x17   : > { %1919 = sst [smem:[#allocation21_spill]] %s1333_s24  ;;  %s237_s8 = sand.u32 1, %s1361_s6  }
  0x18   : > { %1920 = sst [smem:[#allocation22_spill]] %s1341_s26  ;;  %p85_p3 = por %p83_p1, %p1891_p0 }
  0x19   : > { %1921 = sst [smem:[#allocation23_spill]] %s1345_s27  ;;  %s1484_s9 = sand.u32 1, %s1329_s23  }
  0x1a   : > { %1922 = sst [smem:[#allocation24_spill]] %s1349_s28  ;;  %s861_s10 = sshll.u32 %s1353_s29, 8 }
  0x1b   : > { %1923 = sst [smem:[#allocation25_spill]] %s1357_s30  ;;  %s833_s11 = sshll.u32 %s1484_s9, 4 }
  0x1c   : > { %s1924_s1 = sld [smem:[#allocation35_spill]]  ;;  %p1495_p4 = pnand %p1890_p2, %p85_p3 }
  0x1d   : > { %s241_s16 = scalar_lea.vmem [#allocation5], %s833_s11  ;;  %s1502_s7 = scalar_lea.sflag [#allocation6], %s237_s8 }
  0x1e   : > { %s1925_s15 = scalar_select %p1495_p4, 1, 0 }
  0x1f   : > { %s248_s17 = sshll.u32 %s241_s16, 4  ;;  %p1508_p7 = pneg %p1495_p4  ;;  %s1499_s17 = int_to_ptr.vmem [resolvable:$true] %s248_s17 }
  0x22   : > { %s1491_s14 = scalar_lea.hbm %s1924_s1, %s861_s10  ;;  %s1060_s11 = scalar_lea.hbm %s1924_s1, 1024 }
  0x23   : > { %s1055_s12 = scalar_lea.hbm %s1491_s14, 256  ;;  %p1061_p10 = scmp.lt.u32.totalorder %s1491_s14, %s1924_s1 }
  0x24   : > { %p1056_p6 = scmp.ne.s32.totalorder %s1491_s14, %s1055_s12  ;;  %p1062_p11 = scmp.lt.u32.totalorder %s1060_s11, %s1055_s12 }
  0x25   : > { %p1064_p13 = scmp.lt.u32.totalorder %s1055_s12, %s1491_s14 }
  0x26   : > { %p1058_p8 = pnand %p1508_p7, %p1056_p6  ;;  %p1063_p12 = por %p1062_p11, %p1061_p10 }
  0x28   : > { %p1059_p9 = pneg %p1058_p8  ;;  %p1065_p1 = por %p1064_p13, %p1063_p12 }
  0x2a   : > { %p1066_p3 = pnand %p1065_p1, %p1059_p9 }
  0x2c   : > { %1069 = shalt.err (!%p1066_p3)
}
  0x2d   : > { %s1070_s8 = scalar_lea.vmem %s1499_s17, 256  ;;  %s1363_s5 = smov [#allocation5]  }
  0x2e   : > { %p1071_p6 = scmp.ne.s32.totalorder %s1499_s17, %s1070_s8  ;;  %s1075_s13 = sshll.u32 %s1363_s5, 4  ;;  %s1076_s13 = int_to_ptr.vmem [resolvable:$false] %s1075_s13 }
  0x2f   : > { %s1077_s4 = scalar_lea.vmem %s1076_s13, 512  ;;  %p1078_p0 = scmp.lt.s32.totalorder %s1499_s17, %s1076_s13 }
  0x30   : > { %p1073_p8 = pnand %p1071_p6, %p1508_p7  ;;  %p1079_p5 = scmp.lt.s32.totalorder %s1077_s4, %s1070_s8 }
  0x32   : > { %p1074_p2 = pneg %p1073_p8  ;;  %p1080_p10 = por %p1079_p5, %p1078_p0 }
  0x34   : > { %p1081_p11 = pnand %p1080_p10, %p1074_p2 }
  0x36   : > { %1084 = shalt.err (!%p1081_p11)
}
  0x37   : > { %s1364_s12 = smov 64   ;;  %s1365_s11 = smov 4  }
  0x38   : > { %915 = dma.hbm_to_vmem [thread:$0]  (!%p1495_p4), %s1491_s14, 256, %s1499_s17, %s1502_s7, %s1364_s12, %s1364_s12, %s1365_s11  }
  0x39   : > { %p291_p0 = scmp.lt.s32.totalorder %s1361_s6, 9  ;;  %p1927_p2 = scmp.ge.s32.totalorder %s1361_s6, 1 }
  0x3a   : > { %s1540_s8 = sadd.s32 4294967295, %s1361_s6   ;;  %s828_s5 = sadd.s32 4294967294, %s1361_s6  }
  0x3b   : > { %p1535_p5 = pnand %p1927_p2, %p291_p0  ;;  %s40_s13 = sadd.s32 1, %s1353_s29 }
  0x3c   : > { %s43_s4 = sadd.s32 1, %s1357_s30  ;;  %p41_p9 = scmp.ge.s32.totalorder %s40_s13, 4 }
  0x3d   : > { %s1928_s16 = scalar_select %p1535_p5, 1, 0 }
  0x3e   : > { %s50_s14 = sadd.s32 1, %s1341_s26  ;;  %p57_p12 = scmp.ne.s32.totalorder %s1341_s26, %s1337_s25 }
  0x3f   : > { %1929 = sst [smem:[#allocation26_spill]] %s1928_s16  ;;  %p1894_p13 = scmp.ne.s32.totalorder %s1337_s25, %s1333_s24 }
  0x40   : > { %s1990_s13 = smov (%p41_p9, %s40_s13), 0  ;;  %s1992_s4 = smov (!%p41_p9, %s43_s4), %s1357_s30 }
  0x41   : > { %1930 = sst [smem:[#allocation27_spill]] %s1990_s13  ;;  %p1931_p1 = scmp.eq.s32.totalorder %s1361_s6, 0 }
  0x42   : > { %p64_p6 = scmp.eq.s32.totalorder %s1540_s8, 0  ;;  %p45_p8 = scmp.ge.s32.totalorder %s1992_s4, 2 }
  0x43   : > { %p1558_p3 = por %p1931_p1, %p57_p12  ;;  %s73_s12 = ssub.s32 %s1353_s29, %s1990_s13 }
  0x44   : > { %p1568_p10 = por %p64_p6, %p1894_p13  ;;  %p74_p11 = scmp.eq.s32.totalorder %s73_s12, 0 }
  0x45   : > { %s1994_s4 = smov (%p45_p8, %s1992_s4), 0  ;;  %s1936_s1 = sadd.s32 1, %s1329_s23 }
  0x46   : > { %s1933_s11 = scalar_select %p1568_p10, 1, 0 }
  0x47   : > { %1935 = sst [smem:[#allocation29_spill]] %s1994_s4  ;;  %s47_s27 = ssub.s32 %s1357_s30, %s1994_s4 }
  0x48   : > { %1934 = sst [smem:[#allocation28_spill]] %s1933_s11  ;;  %p89_p0 = scmp.ne.s32.totalorder %s1325_s22, %s1321_s21 }
  0x49   : > { %s1577_s28 = scalar_select %p74_p11, %s1329_s23, %s1936_s1  }
  0x4a   : > { %p48_p2 = scmp.eq.s32.totalorder %s47_s27, 0  ;;  %p165_p9 = scmp.eq.s32.totalorder %s1540_s8, 7 }
  0x4b   : > { %1937 = sst [smem:[#allocation30_spill]] %s1577_s28  ;;  %p1584_p1 = por %p89_p0, %p64_p6 }
  0x4c   : > { %p171_p13 = scmp.eq.s32.totalorder %s828_s5, 7  ;;  %p1596_p8 = por %p165_p9, %p57_p12 }
  0x4d   : > { %s1938_s13 = scalar_select %p1584_p1, 1, 0 }
  0x4e   : > { %s1589_s11 = scalar_select %p48_p2, %s1341_s26, %s50_s14  }
  0x4f   : > { %s1940_s16 = scalar_select %p1596_p8, 1, 0 }
  0x50   : > { %1939 = sst [smem:[#allocation31_spill]] %s1589_s11  ;;  %p1941_p11 = scmp.ne.s32.totalorder %s1337_s25, %s1333_s24 }
  0x51   : > { %s179_s21 = sor.u32 %s73_s12, %s47_s27  ;;  %s182_s4 = sadd.s32 1, %s1317_s20 }
  0x52   : > { %p1603_p10 = por %p171_p13, %p1941_p11  ;;  %p180_p6 = scmp.eq.s32.totalorder %s179_s21, 0 }
  0x53   : > { %p192_p0 = scmp.ne.s32.totalorder %s1317_s20, %s1313_s19  ;;  %p198_p2 = scmp.ne.s32.totalorder %s1313_s19, %s1309_s18 }
  0x54   : > { %s1942_s1 = scalar_select %p1603_p10, 1, 0 }
  0x55   : > { %s219_s5 = sand.u32 1, %s1341_s26   ;;  %p1618_p12 = por %p192_p0, %p165_p9 }
  0x56   : > { %1943 = sst [smem:[#allocation32_spill]] %s1942_s1  ;;  %p1622_p11 = por %p198_p2, %p171_p13 }
  0x57   : > { %s1614_s14 = scalar_select %p180_p6, %s1317_s20, %s182_s4  }
  0x58   : > { %s1945_s11 = scalar_select %p1618_p12, 1, 0 }
  0x59   : > { %1944 = sst [smem:[#allocation33_spill]] %s1614_s14  ;;  %s831_s23 = sshll.u32 %s219_s5, 2 }
  0x5a   : > { %s1946_s28 = scalar_select %p1622_p11, 1, 0 }
  0x5b   : > { %s832_s1 = sshll.u32 %s1357_s30, 6  ;;  %s223_s4 = scalar_lea.vmem [#allocation2], %s831_s23 }
  0x5c   : > { %1947 = sst [smem:[#allocation34_spill]] %s1946_s28  ;;  %s1630_s21 = scalar_lea.hbm %s1882_s0, %s832_s1 }
  0x5d   : > { %s230_s26 = sshll.u32 %s223_s4, 4  ;;  %p1948_p13 = scmp.lt.s32.totalorder %s1361_s6, 8  ;;  %s1632_s26 = int_to_ptr.vmem [resolvable:$true] %s230_s26 }
  0x5e   : > { %s836_s30 = sshll.u32 %s1353_s29, 4  ;;  %s220_s20 = scalar_lea.sflag [#allocation3], %s219_s5 }
  0x5f   : > { %p1638_p9 = pnand %p1948_p13, %p1558_p3  ;;  %s1646_s12 = scalar_lea.hbm %s1884_s2, %s836_s30 }
  0x60   : > { %s1085_s23 = scalar_lea.hbm %s1630_s21, 64  ;;  %s1090_s28 = scalar_lea.hbm %s1882_s0, 128 }
  0x61   : > { %p1086_p6 = scmp.ne.s32.totalorder %s1630_s21, %s1085_s23  ;;  %p1087_p0 = pneg %p1638_p9 }
  0x62   : > { %p1091_p13 = scmp.lt.u32.totalorder %s1630_s21, %s1882_s0  ;;  %p1092_p11 = scmp.lt.u32.totalorder %s1090_s28, %s1085_s23 }
  0x63   : > { %p1088_p2 = pnand %p1087_p0, %p1086_p6  ;;  %p1094_p12 = scmp.lt.u32.totalorder %s1085_s23, %s1630_s21 }
  0x64   : > { %p1093_p10 = por %p1092_p11, %p1091_p13 }
  0x65   : > { %p1089_p3 = pneg %p1088_p2 }
  0x66   : > { %p1095_p8 = por %p1094_p12, %p1093_p10 }
  0x68   : > { %p1096_p1 = pnand %p1095_p8, %p1089_p3 }
  0x6a   : > { %1099 = shalt.err (!%p1096_p1)
}
  0x6b   : > { %s1100_s30 = scalar_lea.vmem %s1632_s26, 64  ;;  %s1366_s5 = smov [#allocation2]  }
  0x6c   : > { %p1101_p6 = scmp.ne.s32.totalorder %s1632_s26, %s1100_s30  ;;  %s1105_s27 = sshll.u32 %s1366_s5, 4  ;;  %s1106_s27 = int_to_ptr.vmem [resolvable:$false] %s1105_s27 }
  0x6d   : > { %s1107_s18 = scalar_lea.vmem %s1106_s27, 128  ;;  %p1108_p4 = scmp.lt.s32.totalorder %s1632_s26, %s1106_s27 }
  0x6e   : > { %p1103_p2 = pnand %p1101_p6, %p1087_p0  ;;  %p1109_p11 = scmp.lt.s32.totalorder %s1107_s18, %s1100_s30 }
  0x70   : > { %p1104_p5 = pneg %p1103_p2  ;;  %p1110_p13 = por %p1109_p11, %p1108_p4 }
  0x72   : > { %p1111_p10 = pnand %p1110_p13, %p1104_p5 }
  0x74   : > { %1114 = shalt.err (!%p1111_p10)
}
  0x75   : > { %912 = dma.hbm_to_vmem [thread:$0]  (!%p1638_p9), %s1630_s21, 64, %s1632_s26, %s220_s20  }
  0x76   : > { %s261_s24 = scalar_lea.vmem [#allocation7], %s1484_s9  ;;  %s837_s1 = sshll.u32 %s1484_s9, 2 }
  0x77   : > { %s268_s28 = sshll.u32 %s261_s24, 4  ;;  %s1115_s23 = scalar_lea.hbm %s1646_s12, 16  ;;  %s269_s28 = int_to_ptr.vmem [resolvable:$true] %s268_s28 }
  0x78   : > { %p1116_p4 = scmp.ne.s32.totalorder %s1646_s12, %s1115_s23  ;;  %s1120_s4 = scalar_lea.hbm %s1884_s2, 64 }
  0x79   : > { %p1121_p8 = scmp.lt.u32.totalorder %s1646_s12, %s1884_s2  ;;  %p1122_p12 = scmp.lt.u32.totalorder %s1120_s4, %s1115_s23 }
  0x7a   : > { %p1118_p5 = pnand %p1116_p4, %p1508_p7  ;;  %p1124_p9 = scmp.lt.u32.totalorder %s1115_s23, %s1646_s12 }
  0x7b   : > { %p1123_p0 = por %p1122_p12, %p1121_p8 }
  0x7c   : > { %p1119_p1 = pneg %p1118_p5 }
  0x7d   : > { %p1125_p3 = por %p1124_p9, %p1123_p0 }
  0x7f   : > { %p1126_p6 = pnand %p1125_p3, %p1119_p1 }
  0x81   : > { %1129 = shalt.err (!%p1126_p6)
}
  0x82   : > { %s1130_s20 = scalar_lea.vmem %s269_s28, 16  ;;  %s1367_s26 = smov [#allocation7]  }
  0x83   : > { %p1131_p2 = scmp.ne.s32.totalorder %s269_s28, %s1130_s20  ;;  %s1135_s21 = sshll.u32 %s1367_s26, 4  ;;  %s1136_s21 = int_to_ptr.vmem [resolvable:$false] %s1135_s21 }
  0x84   : > { %s1137_s27 = scalar_lea.vmem %s1136_s21, 32  ;;  %p1138_p10 = scmp.lt.s32.totalorder %s269_s28, %s1136_s21 }
  0x85   : > { %p1133_p11 = pnand %p1131_p2, %p1508_p7  ;;  %p1139_p4 = scmp.lt.s32.totalorder %s1137_s27, %s1130_s20 }
  0x87   : > { %p1134_p13 = pneg %p1133_p11  ;;  %p1140_p5 = por %p1139_p4, %p1138_p10 }
  0x89   : > { %p1141_p8 = pnand %p1140_p5, %p1134_p13 }
  0x8b   : > { %1144 = shalt.err (!%p1141_p8)
}
  0x8c   : > { %p1950_p12 = scmp.ne.s32.totalorder %s1925_s15, 0  ;;  %s838_s18 = sshll.u32 %s1353_s29, 6 }
  0x8d   : > { %s1697_s14 = scalar_lea.hbm %s1885_s3, %s838_s18  ;;  %s279_s17 = scalar_lea.vmem [#allocation8], %s837_s1 }
  0x8e   : > { %918 = dma.hbm_to_vmem [thread:$0]  (!%p1950_p12), %s1646_s12, 16, %s269_s28, %s1502_s7  }
  0x8f   : > { %s286_s4 = sshll.u32 %s279_s17, 4  ;;  %s276_s30 = scalar_lea.sflag [#allocation9], %s1484_s9  ;;  %s287_s4 = int_to_ptr.vmem [resolvable:$true] %s286_s4 }
  0x90   : > { %s1145_s5 = scalar_lea.hbm %s1697_s14, 64  ;;  %s1150_s28 = scalar_lea.hbm %s1885_s3, 256 }
  0x91   : > { %p1146_p1 = scmp.ne.s32.totalorder %s1697_s14, %s1145_s5  ;;  %p1151_p3 = scmp.lt.u32.totalorder %s1697_s14, %s1885_s3 }
  0x92   : > { %p1152_p6 = scmp.lt.u32.totalorder %s1150_s28, %s1145_s5  ;;  %p1154_p11 = scmp.lt.u32.totalorder %s1145_s5, %s1697_s14 }
  0x93   : > { %p1148_p0 = pnand %p1146_p1, %p1508_p7 }
  0x94   : > { %p1153_p2 = por %p1152_p6, %p1151_p3 }
  0x95   : > { %p1149_p9 = pneg %p1148_p0 }
  0x96   : > { %p1155_p13 = por %p1154_p11, %p1153_p2 }
  0x98   : > { %p1156_p10 = pnand %p1155_p13, %p1149_p9 }
  0x9a   : > { %1159 = shalt.err (!%p1156_p10)
}
  0x9b   : > { %s1160_s9 = scalar_lea.vmem %s287_s4, 64  ;;  %s1368_s1 = smov [#allocation8]  }
  0x9c   : > { %p1161_p4 = scmp.ne.s32.totalorder %s287_s4, %s1160_s9  ;;  %s1165_s21 = sshll.u32 %s1368_s1, 4  ;;  %s1166_s21 = int_to_ptr.vmem [resolvable:$false] %s1165_s21 }
  0x9d   : > { %s1167_s27 = scalar_lea.vmem %s1166_s21, 128  ;;  %p1168_p1 = scmp.lt.s32.totalorder %s287_s4, %s1166_s21 }
  0x9e   : > { %p1163_p5 = pnand %p1161_p4, %p1508_p7  ;;  %p1169_p0 = scmp.lt.s32.totalorder %s1167_s27, %s1160_s9 }
  0xa0   : > { %p1164_p8 = pneg %p1163_p5  ;;  %p1170_p12 = por %p1169_p0, %p1168_p1 }
  0xa2   : > { %p1171_p3 = pnand %p1170_p12, %p1164_p8 }
  0xa4   : > { %1174 = shalt.err (!%p1171_p3)
}
  0xa5   : > { %p1951_p6 = scmp.ne.s32.totalorder %s1925_s15, 0  ;;  %s1952_s18 = sld [smem:[#allocation26_spill]] }
  0xa7   : > { %921 = dma.hbm_to_vmem [thread:$0]  (!%p1951_p6), %s1697_s14, 64, %s287_s4, %s276_s30  }
  0xab   : > { %p1953_p9 = scmp.ne.s32.totalorder %s1952_s18, 0 }
  0xac   : > { %s1954_s10 = sld [smem:[#allocation28_spill]] (!%p1953_p9)  ;;  %s1722_s24 = sand.u32 (!%p1953_p9), 1, %s1337_s25  }
  0xad   : > { %295 = sbr.rel (%p1953_p9) target bundleno = 1565 (0x61d), region = 36  ;;  %s840_s23 = sshll.u32 (!%p1953_p9), %s1722_s24, 2 }
  0xae   : > { %s298_s17 = scalar_lea.sflag (!%p1953_p9), [#allocation3], %s1722_s24  ;;  %s301_s5 = scalar_lea.vmem (!%p1953_p9), [#allocation2], %s840_s23 }
  0xb2   : > { %p1955_p7 = scmp.ne.s32.totalorder (!%p1953_p9), %s1954_s10, 0 }
  0xb4   : > { %1288 = dma.done.wait (%p1955_p7), %s298_s17, 64  }
  0xb5   : > { %1290 = vsyncadd (%p1955_p7), %s298_s17, 4294967232  ;;  %s306_s15 = sand.u32 1, %s1540_s8   ;;  %s1732_s14 = sand.u32 1, %s1325_s22  }
  0xb6   : > { %s841_s4 = sshll.u32 %s1732_s14, 4  ;;  %s307_s30 = scalar_lea.sflag [#allocation6], %s306_s15 }
  0xb7   : > { %s310_s7 = scalar_lea.vmem [#allocation5], %s841_s4  ;;  %p1956_p12 = scmp.ne.s32.totalorder %s1938_s13, 0 }
  0xb9   : > { %1292 = dma.done.wait (%p1956_p12), %s307_s30, 272  }
  0xba   : > { %1294 = vsyncadd (%p1956_p12), %s307_s30, 4294967024  ;;  %s842_s12 = sshll.u32 %s1732_s14, 2  ;;  %s318_s28 = scalar_lea.vmem [#allocation7], %s1732_s14 }
  0xbb   : > { %s324_s20 = scalar_lea.sflag [#allocation9], %s1732_s14  ;;  %s1742_s26 = scalar_lea.vmem [#allocation8], %s842_s12 }
  0xbc   : > { %1296 = dma.done.wait (%p1956_p12), %s324_s20, 64  }
  0xbd   : > { %1298 = vsyncadd (%p1956_p12), %s324_s20, 4294967232  ;;  %s843_s8 = sshll.u32 %s1722_s24, 3  ;;  %v1369_v0 = vmov 0.0   ;;  %vm1370_vm0 = vmmov 0   ;;  %v1049_v1 = vld [vmem:[%s310_s7] sm:$0xff]   ;;  %v1050_v2 = vld [vmem:[%s310_s7 + $0x8] sm:$0xff]  }
  0xbe   : > { %871 = vmatprep.subr.bf16.mxu0 %v1369_v0  ;;  %875 = vmatprep.mubr.msk.bf16.mxu0 %vm1370_vm0, %v1369_v0  ;;  %v374_v3 = vld [vmem:[%s301_s5] sm:$0xf]  ;;  %vm398_vm1 = vcmask 261120   ;;  %s1371_s13 = smov 120   ;;  %vm446_vm2 = vcmask 64512   ;;  %s1372_s9 = smov 112  }
  0xbf   : > { %879 = vmatprep.subr.bf16.mxu1 %v1369_v0  ;;  %881 = vmatprep.mubr.msk.bf16.mxu1 %vm1370_vm0, %v1369_v0  ;;  %v845_v4 = vld [vmem:[%s318_s28] ss:$0 sm:$0xff]  ;;  %vm511_vm3 = vcmask 1043456   ;;  %v556_v23 = vld [vmem:[%s1742_s26] sm:$0xf]  ;;  %s370_s1 = sand.u32 1, %s1313_s19  }
  0xc0   : > { %872 = vmatpush3.bf16.msra.mxu0 %v1049_v1  ;;  %v561_v24 = vsel %vm511_vm3, %v556_v23, 0  ;;  %s1762_s21 = sshll.u32 %s370_s1, 3  ;;  %s365_s18 = scalar_lea.vmem [#allocation10], %s843_s8 }
  0xc1   : > { %873 = vmatprep.subr.bf16.mxu0 %v1369_v0  ;;  %s372_s27 = scalar_lea.vmem [#allocation11], %s1762_s21  ;;  %s1957_s10 = sld [smem:[#allocation23_spill]] }
  0xc4   : > { %874 = vmatpush3.bf16.msra.mxu0 %v1050_v2 }
  0xc5   : > { %885 = vmatprep.subr.bf16.mxu0 %v1369_v0 }
  0xc7   : > { %876 = vmatmul.mubr.msk.bf16.vlgmr.msra.gmra.mrb[0].mxu0 %vm398_vm1, %v374_v3  ;;  %p852_p2 = scmp.ne.s32.totalorder %s1957_s10, 0 }
  0xc8   : > { %887 = vmatprep.mubr.msk.bf16.mxu0 %vm1370_vm0, %v1369_v0 }
 0x19a   : > { %v436_v5 = vpop.f32.mrb[0].mxu0 }
 0x19b   : > { %v437_v6 = vadd.f32 %v845_v4, %v436_v5  ;;  %v877_v7 = vpop.f32.mrb[1].mxu0 }
 0x19c   : > { %v439_v8 = vpop.f32.mrb[2].mxu0 }
 0x19d   : > { %v442_v9 = vpack.c.bf16 %v437_v6, %v437_v6  ;;  %v878_v10 = vpop.f32.mrb[3].mxu0 }
 0x19f   : > { %444 = vrot.lane.b32.xlu0 %v442_v9, %s1371_s13 }
 0x211   : > { %v445_v11 = vpop.permute.xlu0 %444 }
 0x212   : > { %v451_v12 = vsel %vm446_vm2, %v445_v11, 0 }
 0x213   : > { %880 = vmatpush3.bf16.xpose.msra.mxu1 %v451_v12 }
 0x214   : > { %891 = vmatprep.subr.bf16.mxu1 %v1369_v0 }
 0x21a   : > { %882 = vmatmul.mubr.msk.bf16.vlgmr.msra.gmra.mrb[0].mxu1 %vm446_vm2, %v442_v9 }
 0x21b   : > { %893 = vmatprep.mubr.msk.bf16.mxu1 %vm1370_vm0, %v1369_v0  ;;  %892 = vmatpush3.bf16.msra.mxu1 %v561_v24 }
 0x2ed   : > { %v487_v13 = vpop.f32.mrb[0].mxu1 }
 0x2ee   : > { %v883_v14 = vpop.f32.mrb[1].mxu1  ;;  %v493_v15 = vsel %vm446_vm2, %v487_v13, -inf }
 0x2ef   : > { %494 = vmax.xlane.f32.xlu0 %v493_v15  ;;  %v490_v16 = vpop.f32.mrb[2].mxu1 }
 0x2f0   : > { %v884_v17 = vpop.f32.mrb[3].mxu1 }
 0x37c   : > { %v495_v18 = vpop.xlane.xlu0 %494 }
 0x37d   : > { %v496_v19 = vsub.f32 %v487_v13, %v495_v18 }
 0x37f   : > { %v497_v20 = vmul.f32 1.442695, %v496_v19 }
 0x381   : > { %1051 = vpow2.f32 %v497_v20 }
 0x38b   : > { %v1052_v21 = vpop.eup %1051 }
 0x38c   : > { %v499_v22 = vsel %vm446_vm2, %v1052_v21, 0.0 }
 0x38d   : > { %500 = vadd.xlane.f32.xlu1 %v499_v22 }
 0x39e   : > { %506 = vrot.lane.b32.xlu1 %v442_v9, %s1372_s9 }
 0x41a   : > { %v501_v25 = vpop.xlane.xlu1 %500 }
 0x41b   : > { %1053 = vrcp.f32 %v501_v25 }
 0x41e   : > { %v507_v26 = vpop.permute.xlu1 %506 }
 0x41f   : > { %v513_v27 = vsel %vm511_vm3, %v507_v26, 0 }
 0x420   : > { %886 = vmatpush3.bf16.msra.mxu0 %v513_v27 }
 0x425   : > { %v1054_v28 = vpop.eup %1053 }
 0x426   : > { %v503_v29 = vmul.f32 %v1054_v28, %v1052_v21 }
 0x428   : > { %504 = vst.msk [vmem:[%s372_s27] sm:$0xff] %vm446_vm2, %v503_v29  ;;  %v505_v30 = vpack.c.bf16 %v503_v29, %v503_v29 }
 0x42a   : > { %888 = vmatmul.mubr.msk.bf16.vlgmr.msra.gmra.mrb[4].mxu0 %vm446_vm2, %v505_v30 }
 0x4fd   : > { %v549_v31 = vpop.f32.mrb[4].mxu0 }
 0x4fe   : > { %v555_v32 = vpack.c.bf16 %v549_v31, %v549_v31  ;;  %v889_v33 = vpop.f32.mrb[5].mxu0 }
 0x4ff   : > { %v552_v34 = vpop.f32.mrb[6].mxu0 }
 0x500   : > { %v890_v35 = vpop.f32.mrb[7].mxu0  ;;  %894 = vmatmul.mubr.msk.bf16.vlgmr.msra.gmra.mrb[4].mxu1 %vm446_vm2, %v555_v32 }
 0x5d0   : > { %606 = sbr.rel (%p852_p2) target bundleno = 1495 (0x5d7), region = 56 }
 0x5d3   : > { %v597_v36 = vpop.f32.mrb[4].mxu1 }
 0x5d4   : > { %v895_v37 = vpop.f32.mrb[5].mxu1  ;;  %607 = vst.msk [vmem:[%s365_s18] sm:$0xff] (!%p852_p2), %vm398_vm1, %v597_v36 }
 0x5d5   : > { %v600_v38 = vpop.f32.mrb[6].mxu1 }
 0x5d6   : > { %v896_v39 = vpop.f32.mrb[7].mxu1 }
 0x5d7 PF: > { %s1958_s23 = sld [smem:[#allocation23_spill]] }
 0x5dd   : > { %p853_p11 = scmp.le.s32.totalorder %s1958_s23, 0 }
 0x5de   : > { %v612_v40 = vld [vmem:[%s365_s18] sm:$0xff] (!%p853_p11) }
 0x5df   : > { %611 = sbr.rel (%p853_p11) target bundleno = 1510 (0x5e6), region = 60  ;;  %v613_v41 = vadd.f32 (!%p853_p11), %v612_v40, %v597_v36 }
 0x5e1   : > { %614 = vst.msk [vmem:[%s365_s18] sm:$0xff] (!%p853_p11), %vm398_vm1, %v613_v41 }
 0x5e6 PF: > { %s1959_s17 = sld [smem:[#allocation24_spill]]  ;;  %s1960_s4 = sld [smem:[#allocation36_spill]] }
 0x5e7   : > { %s634_s7 = sshll.u32 %s365_s18, 4  ;;  %s616_s12 = scalar_lea.sflag [#allocation4], %s1722_s24  ;;  %s635_s7 = int_to_ptr.vmem [resolvable:$true] %s634_s7 }
 0x5e8   : > { %s1175_s28 = scalar_lea.vmem %s635_s7, 128  ;;  %p1961_p10 = scmp.ne.s32.totalorder %s1940_s16, 0 }
 0x5e9   : > { %p1176_p13 = scmp.ne.s32.totalorder %s635_s7, %s1175_s28  ;;  %s1373_s20 = smov [#allocation10]  }
 0x5ea   : > { %s1179_s26 = sshll.u32 %s1373_s20, 4  ;;  %s1180_s26 = int_to_ptr.vmem [resolvable:$false] %s1179_s26 }
 0x5eb   : > { %p1177_p4 = pnand %p1176_p13, %p1961_p10  ;;  %s1181_s8 = scalar_lea.vmem %s1180_s26, 256 }
 0x5ec   : > { %s856_s5 = sshll.u32 %s1959_s17, 7  ;;  %p1182_p8 = scmp.lt.s32.totalorder %s635_s7, %s1180_s26 }
 0x5ed   : > { %s1780_s30 = scalar_lea.hbm %s1960_s4, %s856_s5  ;;  %p1178_p5 = pneg %p1177_p4 }
 0x5ee   : > { %p1183_p1 = scmp.lt.s32.totalorder %s1181_s8, %s1175_s28 }
 0x5f0   : > { %p1184_p0 = por %p1183_p1, %p1182_p8 }
 0x5f2   : > { %p1185_p3 = pnand %p1184_p0, %p1178_p5 }
 0x5f4   : > { %1188 = shalt.err (!%p1185_p3)
}
 0x5f5   : > { %s1189_s24 = scalar_lea.hbm %s1780_s30, 128  ;;  %s1193_s18 = scalar_lea.hbm %s1960_s4, 256 }
 0x5f6   : > { %p1190_p6 = scmp.ne.s32.totalorder %s1780_s30, %s1189_s24  ;;  %p1194_p12 = scmp.lt.u32.totalorder %s1780_s30, %s1960_s4 }
 0x5f7   : > { %p1195_p2 = scmp.lt.u32.totalorder %s1193_s18, %s1189_s24  ;;  %p1197_p13 = scmp.lt.u32.totalorder %s1189_s24, %s1780_s30 }
 0x5f8   : > { %p1191_p9 = pnand %p1190_p6, %p1961_p10 }
 0x5f9   : > { %p1196_p11 = por %p1195_p2, %p1194_p12 }
 0x5fa   : > { %p1192_p7 = pneg %p1191_p9 }
 0x5fb   : > { %p1198_p4 = por %p1197_p13, %p1196_p11 }
 0x5fd   : > { %p1199_p5 = pnand %p1198_p4, %p1192_p7 }
 0x5ff   : > { %1202 = shalt.err (!%p1199_p5)
}
 0x600   : > { %s1962_s5 = sld [smem:[#allocation23_spill]]  ;;  %s857_s15 = sshll.u32 %s1959_s17, 2 }
 0x601   : > { %905 = dma.vmem_to_hbm [thread:$0]  (%p1961_p10), %s635_s7, 128, %s1780_s30, %s616_s12  }
 0x602   : > { %s649_s14 = sshll.u32 %s372_s27, 4  ;;  %s1963_s16 = sld [smem:[#allocation37_spill]]  ;;  %s1804_s14 = int_to_ptr.vmem [resolvable:$true] %s649_s14 }
 0x603   : > { %s621_s13 = scalar_lea.sflag [#allocation12], %s370_s1  ;;  %s1203_s9 = scalar_lea.vmem %s1804_s14, 128 }
 0x604   : > { %p1204_p8 = scmp.ne.s32.totalorder %s1804_s14, %s1203_s9  ;;  %p1964_p1 = scmp.ne.s32.totalorder %s1945_s11, 0 }
 0x605   : > { %s1374_s21 = smov [#allocation11]  }
 0x606   : > { %s645_s28 = sadd.s32 %s1962_s5, %s857_s15  ;;  %p1205_p10 = pnand %p1204_p8, %p1964_p1 }
 0x607   : > { %s858_s20 = sshll.u32 %s645_s28, 7  ;;  %s1207_s27 = sshll.u32 %s1374_s21, 4  ;;  %s1208_s27 = int_to_ptr.vmem [resolvable:$false] %s1207_s27 }
 0x608   : > { %s647_s24 = scalar_lea.hbm %s1963_s16, %s858_s20  ;;  %p1206_p0 = pneg %p1205_p10 }
 0x609   : > { %s1209_s17 = scalar_lea.vmem %s1208_s27, 256  ;;  %p1210_p3 = scmp.lt.s32.totalorder %s1804_s14, %s1208_s27 }
 0x60a   : > { %p1211_p6 = scmp.lt.s32.totalorder %s1209_s17, %s1203_s9 }
 0x60c   : > { %p1212_p9 = por %p1211_p6, %p1210_p3 }
 0x60e   : > { %p1213_p7 = pnand %p1212_p9, %p1206_p0 }
 0x610   : > { %1216 = shalt.err (!%p1213_p7)
}
 0x611   : > { %s1217_s30 = scalar_lea.hbm %s647_s24, 128  ;;  %s1221_s12 = scalar_lea.hbm %s1963_s16, 1024 }
 0x612   : > { %p1218_p12 = scmp.ne.s32.totalorder %s647_s24, %s1217_s30  ;;  %p1222_p13 = scmp.lt.u32.totalorder %s647_s24, %s1963_s16 }
 0x613   : > { %p1223_p4 = scmp.lt.u32.totalorder %s1221_s12, %s1217_s30  ;;  %p1225_p8 = scmp.lt.u32.totalorder %s1217_s30, %s647_s24 }
 0x614   : > { %p1219_p2 = pnand %p1218_p12, %p1964_p1 }
 0x615   : > { %p1224_p5 = por %p1223_p4, %p1222_p13 }
 0x616   : > { %p1220_p11 = pneg %p1219_p2 }
 0x617   : > { %p1226_p10 = por %p1225_p8, %p1224_p5 }
 0x619   : > { %p1227_p0 = pnand %p1226_p10, %p1220_p11 }
 0x61b   : > { %1230 = shalt.err (!%p1227_p0)
}
 0x61c   : > { %906 = dma.vmem_to_hbm [thread:$0]  (%p1964_p1), %s1804_s14, 128, %s647_s24, %s621_s13  }
 0x61d PF: > { %s1965_s23 = sld [smem:[#allocation21_spill]]  ;;  %s1966_s5 = sld [smem:[#allocation32_spill]] }
 0x61e   : > { %p930_p3 = scmp.ge.s32.totalorder %s1361_s6, 2 }
 0x623   : > { %s661_s15 = sand.u32 1, %s1965_s23   ;;  %p1967_p6 = scmp.ne.s32.totalorder %s1966_s5, 0 }
 0x624   : > { %s662_s28 = scalar_lea.sflag [#allocation4], %s661_s15 }
 0x625   : > { %p923_p9 = pnand %p930_p3, %p1967_p6 }
 0x627   : > { %1300 = dma.done.wait (!%p923_p9), %s662_s28, 128  }
 0x628   : > { %1302 = vsyncadd (!%p923_p9), %s662_s28, 4294967168  ;;  %s1968_s20 = sld [smem:[#allocation18_spill]]  ;;  %s1969_s26 = sld [smem:[#allocation34_spill]] }
 0x62e   : > { %s670_s8 = sand.u32 1, %s1968_s20   ;;  %p1970_p7 = scmp.ne.s32.totalorder %s1969_s26, 0 }
 0x62f   : > { %s671_s9 = scalar_lea.sflag [#allocation12], %s670_s8 }
 0x630   : > { %p926_p12 = pnand %p930_p3, %p1970_p7 }
 0x632   : > { %1304 = dma.done.wait (!%p926_p12), %s671_s9, 128  }
 0x633   : > { %1306 = vsyncadd (!%p926_p12), %s671_s9, 4294967168  ;;  %s31_s6 = sadd.s32 1, %s1361_s6   ;;  %s1972_s14 = sld [smem:[#allocation19_spill]] }
 0x634   : > { %p1835_p1 = scmp.ge.s32.totalorder %s31_s6, 10   ;;  %s1973_s20 = sld [smem:[#allocation33_spill]] }
 0x635   : > { %s1974_s24 = sld [smem:[#allocation20_spill]]  ;;  %s1975_s23 = sld [smem:[#allocation30_spill]] }
 0x636   : > { %s1976_s13 = sld [smem:[#allocation22_spill]]  ;;  %s1977_s26 = sld [smem:[#allocation31_spill]] }
 0x637   : > { %s1978_s28 = sld [smem:[#allocation25_spill]]  ;;  %s1979_s17 = sld [smem:[#allocation27_spill]] }
 0x638   : > { %s1980_s30 = sld [smem:[#allocation29_spill]]  ;;  %s1981_s18 = smov %s1313_s19 }
 0x639   : > { %s1982_s19 = smov %s1972_s14  ;;  %s1983_s21 = smov %s1325_s22 }
 0x63a   : > { %s1987_s27 = smov %s1353_s29  ;;  %30 = sbr.rel (!%p1835_p1) target bundleno = 20 (0x14), region = 143 }
 0x63b   : > { %s1984_s22 = smov %s1974_s24  ;;  %s1985_s24 = smov %s1337_s25 }
 0x63c   : > { %s1986_s25 = smov %s1976_s13 }
 0x63d   : > { %s1988_s29 = smov %s1979_s17 }
 0x641   :  { %676 = vsyncpa [#allocation3], 1 }
 0x642   :  { %678 = vsyncpa [#allocation3 + $0x1], 1 }
 0x643   :  { %679 = vsyncpa [#allocation6], 1 }
 0x644   :  { %681 = vsyncpa [#allocation6 + $0x1], 1 }
 0x645   :  { %682 = vsyncpa [#allocation9], 1 }
 0x646   :  { %684 = vsyncpa [#allocation9 + $0x1], 1 }
 0x647   :  { %685 = vsyncpa [#allocation4], 1 }
 0x648   :  { %687 = vsyncpa [#allocation4 + $0x1], 1 }
 0x649   :  { %688 = vsyncpa [#allocation12], 1 }
 0x64a   :  { %690 = vsyncpa [#allocation12 + $0x1], 1 }

</bundles_post_ra>
